<compile_context>
chip_gen: v7x
topology: tpu7x:2x2x1
jax: 0.10.0
libtpu: 0.0.40
codegen_flags: <defaults>
</compile_context>

<pallas_src>
import jax
import jax.numpy as jnp
from jax.experimental import pallas as pl
from jax.experimental.pallas import tpu as pltpu


def mlp_kernel(x_ref, w1_ref, b1_ref, w2_ref, b2_ref, o_ref):
    # x:  [TB, F] f32  (cast to bf16 here, not in the wrapper)
    # w1: [F, H] bf16   b1: [1, H] f32   w2: [1, H] f32   b2: SMEM (1,) f32
    # o:  [1, TB] f32  (lane-dense: batch on the lane axis -> unmasked stores)
    # Layer 1: MXU matmul, bf16 operands, f32 accumulation.
    h = jnp.dot(x_ref[...].astype(jnp.bfloat16), w1_ref[...],
                preferred_element_type=jnp.float32)               # (TB, H) f32
    h = jnp.maximum(h + b1_ref[...], 0.0)                         # bias + ReLU
    # Layer 2 (out_features == 1): contract over H with the batch landing on the
    # lane axis of the result -> (1, TB) directly (f32; MXU has plenty of slack
    # since F=K caps layer-1 MXU-row utilization at 12.5-25% anyway).
    y = jax.lax.dot_general(w2_ref[...], h, (((1,), (1,)), ((), ())),
                            preferred_element_type=jnp.float32)   # (1, TB)
    o_ref[...] = jax.nn.sigmoid(y + b2_ref[0]).astype(o_ref.dtype)


def mlp_forward(x, w1, b1, w2, b2, *, batch_tile=512, mxu_dtype=jnp.bfloat16):
    """Forward pass. x: [B, F], w1: [F, H], b1: [H], w2: [H], b2: [1] -> [B, 1]."""
    B, F = x.shape
    H = w1.shape[1]

    # One-time, constant-foldable parameter casts.  x stays f32 in HBM and is
    # cast to bf16 inside the kernel (halves effective HBM bytes for x vs a
    # separate wrapper-side cast pass).
    x = x.astype(jnp.float32)
    w1 = w1.astype(mxu_dtype)
    b1 = b1.reshape(1, H).astype(jnp.float32)
    w2 = w2.reshape(1, H).astype(jnp.float32)
    b2 = b2.reshape(1).astype(jnp.float32)

    if B <= batch_tile:
        # Tiny batch: single gridless invocation, everything resident in
        # VMEM/SMEM, no per-step pipeline bookkeeping or double buffering.
        out = pl.pallas_call(
            mlp_kernel,
            out_shape=jax.ShapeDtypeStruct((1, B), jnp.float32),
            in_specs=[
                pl.BlockSpec(memory_space=pltpu.MemorySpace.VMEM),   # x
                pl.BlockSpec(memory_space=pltpu.MemorySpace.VMEM),   # w1
                pl.BlockSpec(memory_space=pltpu.MemorySpace.VMEM),   # b1
                pl.BlockSpec(memory_space=pltpu.MemorySpace.VMEM),   # w2
                pl.BlockSpec(memory_space=pltpu.MemorySpace.SMEM),   # b2 scalar
            ],
            out_specs=pl.BlockSpec(memory_space=pltpu.MemorySpace.VMEM),
        )(x, w1, b1, w2, b2)
        return out.reshape(B, 1)

    # Large batch: tile over B; weights use constant index_maps so the same
    # VMEM block is reused across grid steps.  Output is a lane-dense
    # (num_tiles, 1, tb) slab; padded tail rows are sliced off in the wrapper.
    # VMEM budget per step ~ 2*tb*F*4 (x) + F*H*2 (w1) + tb*H*4 (h) + 2*tb*4
    # (out); keep it well under the v7x 32 MiB scoped default when raising tb.
    tb = max(8, (batch_tile + 7) // 8 * 8)   # f32 x block: sublane multiple of 8
    num_tiles = pl.cdiv(B, tb)
    out = pl.pallas_call(
        mlp_kernel,
        out_shape=jax.ShapeDtypeStruct((num_tiles, 1, tb), jnp.float32),
        grid=(num_tiles,),
        in_specs=[
            pl.BlockSpec((tb, F), lambda i: (i, 0)),                 # x tile
            pl.BlockSpec((F, H), lambda i: (0, 0)),                  # w1 resident
            pl.BlockSpec((1, H), lambda i: (0, 0)),                  # b1 resident
            pl.BlockSpec((1, H), lambda i: (0, 0)),                  # w2 resident
            pl.BlockSpec(memory_space=pltpu.MemorySpace.SMEM),       # b2 scalar
        ],
        out_specs=pl.BlockSpec((None, 1, tb), lambda i: (i, 0, 0)),  # lane-dense
        compiler_params=pltpu.CompilerParams(
            dimension_semantics=("parallel",),
        ),
    )(x, w1, b1, w2, b2)
    return out.reshape(-1)[:B].reshape(B, 1)


def mlp_reference(x, w1, b1, w2, b2):
    """Reference with the same bf16-operand / f32-accumulation layer-1 matmul."""
    h = jnp.dot(x.astype(jnp.bfloat16), w1.astype(jnp.bfloat16),
                preferred_element_type=jnp.float32)
    h = jnp.maximum(h + b1.reshape(1, -1).astype(jnp.float32), 0.0)
    y = jnp.dot(h, w2.reshape(-1, 1).astype(jnp.float32),
                precision=jax.lax.Precision.HIGHEST) + b2.reshape(1, 1)
    return jax.nn.sigmoid(y)


def mlp_reference_f32(x, w1, b1, w2, b2):
    """Pure-f32 reference of the original PyTorch module semantics."""
    h = jnp.maximum(
        jnp.dot(x, w1, precision=jax.lax.Precision.HIGHEST) + b1.reshape(1, -1), 0.0)
    y = jnp.dot(h, w2.reshape(-1, 1),
                precision=jax.lax.Precision.HIGHEST) + b2.reshape(1, 1)
    return jax.nn.sigmoid(y)


if __name__ == "__main__":
    key = jax.random.PRNGKey(0)
    F = 32     # input_feature
    H = 512    # hidden_dim (module default)

    k_x, k_w1, k_b1, k_w2, k_b2, k_x2, k_x3 = jax.random.split(key, 7)

    # Deterministic parameter init (uniform ~ PyTorch Linear default bounds).
    bound1 = 1.0 / float(jnp.sqrt(F))
    w1 = jax.random.uniform(k_w1, (F, H), minval=-bound1, maxval=bound1, dtype=jnp.float32)
    b1 = jax.random.uniform(k_b1, (H,), minval=-bound1, maxval=bound1, dtype=jnp.float32)
    bound2 = 1.0 / float(jnp.sqrt(H))
    w2 = jax.random.uniform(k_w2, (H,), minval=-bound2, maxval=bound2, dtype=jnp.float32)
    b2 = jax.random.uniform(k_b2, (1,), minval=-bound2, maxval=bound2, dtype=jnp.float32)

    # --- Small-batch path: gridless call ---------------------------------
    B = 8
    x = jax.random.normal(k_x, (B, F), dtype=jnp.float32)
    out = jax.block_until_ready(mlp_forward(x, w1, b1, w2, b2))
    ref = mlp_reference(x, w1, b1, w2, b2)
    ref32 = mlp_reference_f32(x, w1, b1, w2, b2)
    assert out.shape == (B, 1), out.shape
    assert jnp.allclose(out, ref, atol=1e-3, rtol=0.0), "mismatch vs bf16-operand reference"
    assert jnp.allclose(out, ref32, atol=2e-2, rtol=0.0), "mismatch vs f32 reference"

    # --- Batch-tiled path with a ragged last tile (B2 % tb != 0) ---------
    B2 = 640
    x2 = jax.random.normal(k_x2, (B2, F), dtype=jnp.float32)
    out2 = jax.block_until_ready(mlp_forward(x2, w1, b1, w2, b2, batch_tile=256))
    ref2 = mlp_reference(x2, w1, b1, w2, b2)
    assert out2.shape == (B2, 1), out2.shape
    assert jnp.allclose(out2, ref2, atol=1e-3, rtol=0.0), "mismatch (tiled, ragged tail)"

    # --- Batch-tiled path, default tile, exact multiple -------------------
    B3 = 1024
    x3 = jax.random.normal(k_x3, (B3, F), dtype=jnp.float32)
    out3 = jax.block_until_ready(mlp_forward(x3, w1, b1, w2, b2))
    ref3 = mlp_reference(x3, w1, b1, w2, b2)
    assert out3.shape == (B3, 1), out3.shape
    assert jnp.allclose(out3, ref3, atol=1e-3, rtol=0.0), "mismatch (tiled, default tile)"

    print("KERNEL_OK")
</pallas_src>

<mosaic_0001>
module attributes {stable_mosaic.version = 11 : i64} {
  func.func @mlp_kernel(%arg0: memref<8x32xf32, #tpu.memory_space<vmem>>, %arg1: memref<32x512xbf16, #tpu.memory_space<vmem>>, %arg2: memref<1x512xf32, #tpu.memory_space<vmem>>, %arg3: memref<1x512xf32, #tpu.memory_space<vmem>>, %arg4: memref<1xf32, #tpu.memory_space<smem>>, %arg5: memref<1x8xf32, #tpu.memory_space<vmem>>) attributes {dimension_semantics = [], scalar_prefetch = 0 : i64, scratch_operands = 0 : i64, tpu.core_type = #tpu.core_type<tc>} {
    %c0 = arith.constant 0 : index
    %c0_0 = arith.constant 0 : index
    %0 = vector.load %arg0[%c0, %c0_0] : memref<8x32xf32, #tpu.memory_space<vmem>>, vector<8x32xf32>
    %1 = arith.truncf %0 : vector<8x32xf32> to vector<8x32xbf16>
    %c0_1 = arith.constant 0 : index
    %c0_2 = arith.constant 0 : index
    %2 = vector.load %arg1[%c0_1, %c0_2] : memref<32x512xbf16, #tpu.memory_space<vmem>>, vector<32x512xbf16>
    %cst = arith.constant dense<0.000000e+00> : vector<8x512xf32>
    %3 = tpu.matmul %1, %2, %cst {dimension_numbers = #tpu.dot_dimension_numbers<[1], [0], [0], [1], [0, 0, 1, 1], [], []>} : vector<8x32xbf16>, vector<32x512xbf16>, vector<8x512xf32> -> vector<8x512xf32>
    %c0_3 = arith.constant 0 : index
    %c0_4 = arith.constant 0 : index
    %4 = vector.load %arg2[%c0_3, %c0_4] : memref<1x512xf32, #tpu.memory_space<vmem>>, vector<1x512xf32>
    %5 = vector.broadcast %4 : vector<1x512xf32> to vector<8x512xf32>
    %6 = arith.addf %3, %5 : vector<8x512xf32>
    %cst_5 = arith.constant 0.000000e+00 : f32
    %7 = vector.broadcast %cst_5 : f32 to vector<8x512xf32>
    %8 = arith.maximumf %6, %7 : vector<8x512xf32>
    %c0_6 = arith.constant 0 : index
    %c0_7 = arith.constant 0 : index
    %9 = vector.load %arg3[%c0_6, %c0_7] : memref<1x512xf32, #tpu.memory_space<vmem>>, vector<1x512xf32>
    %cst_8 = arith.constant dense<0.000000e+00> : vector<1x8xf32>
    %10 = tpu.matmul %9, %8, %cst_8 {dimension_numbers = #tpu.dot_dimension_numbers<[1], [1], [0], [0], [0, 0, 1, 0], [], []>} : vector<1x512xf32>, vector<8x512xf32>, vector<1x8xf32> -> vector<1x8xf32>
    %c0_9 = arith.constant 0 : index
    %11 = memref.load %arg4[%c0_9] : memref<1xf32, #tpu.memory_space<smem>>
    %12 = vector.broadcast %11 : f32 to vector<1x8xf32>
    %13 = arith.addf %10, %12 : vector<1x8xf32>
    %14 = arith.negf %13 : vector<1x8xf32>
    %15 = math.exp %14 : vector<1x8xf32>
    %cst_10 = arith.constant 1.000000e+00 : f32
    %16 = vector.broadcast %cst_10 : f32 to vector<1x8xf32>
    %17 = arith.addf %16, %15 : vector<1x8xf32>
    %18 = arith.divf %16, %17 : vector<1x8xf32>
    %c0_11 = arith.constant 0 : index
    %c0_12 = arith.constant 0 : index
    %19 = vector.load %arg5[%c0_11, %c0_12] : memref<1x8xf32, #tpu.memory_space<vmem>>, vector<1x8xf32>
    tpu.vector_store %arg5[%c0_11, %c0_12], %18 {strides = array<i32>} : memref<1x8xf32, #tpu.memory_space<vmem>>, vector<1x8xf32>,
    return
  }
}

</mosaic_0001>

<bundles_post_ra>
// kernel: tpu_custom_call.1
= control target key start
LH: loop header
LB: loop body
LE: loop exit
PB: predicated region body
PF: predicated region fallthrough
CT: control target
= control target key end

     0   :  { %11 = vsyncpa [#allocation4], 0  ;;  %s594_s0 = inlined_call_operand.hbm [shape: f32[8,32], index: 0, kind: input, shape index: {}]   ;;  %s595_s1 = inlined_call_operand.hbm [shape: bf16[32,512], index: 1, kind: input, shape index: {}]   ;;  %s596_s2 = inlined_call_operand.vmem [shape: f32[1,512], index: 2, kind: input, shape index: {}]   ;;  %s597_s3 = inlined_call_operand.vmem [shape: f32[1,512], index: 3, kind: input, shape index: {}]   ;;  %s598_s4 = inlined_call_operand.<no memory space> [shape: f32[1], index: 4, kind: input, shape index: {}]   ;;  %s599_s5 = inlined_call_operand.hbm [shape: f32[1,8], index: 5, kind: output, shape index: {}]  }
   0x1   :  { %12 = vsyncpa [#allocation7], 0 }
   0x2   :  { %13 = vsyncpa [#allocation5], 0  ;;  %s506_s18 = smov [#allocation3]   ;;  %s507_s20 = smov [#allocation6]  }
   0x3   :  { %s20_s19 = sshll.u32 %s506_s18, 4  ;;  %s29_s21 = sshll.u32 %s507_s20, 4  ;;  %s21_s19 = int_to_ptr.vmem [resolvable:$true] %s20_s19  ;;  %s542_s21 = int_to_ptr.vmem [resolvable:$true] %s29_s21 }
   0x4   :  { %s434_s24 = scalar_lea.hbm %s594_s0, 128 }
   0x5   :  { %p435_p0 = scmp.ne.s32.totalorder %s594_s0, %s434_s24  ;;  %p438_p1 = scmp.lt.u32.totalorder %s434_s24, %s594_s0 }
   0x7   :  { %p440_p2 = pnand %p438_p1, %p435_p0 }
   0x9   :  { %443 = shalt.err (!%p440_p2)
}
   0xa   :  { %s444_s29 = scalar_lea.vmem %s21_s19, 128  ;;  %p449_p4 = scmp.lt.s32.totalorder %s21_s19, %s21_s19 }
   0xb   :  { %p445_p3 = scmp.ne.s32.totalorder %s21_s19, %s444_s29  ;;  %p450_p5 = scmp.lt.s32.totalorder %s444_s29, %s444_s29 }
   0xd   :  { %p451_p6 = por %p450_p5, %p449_p4 }
   0xf   :  { %p452_p7 = pnand %p451_p6, %p445_p3 }
  0x11   :  { %455 = shalt.err (!%p452_p7)
}
  0x12   :  { %23 = dma.hbm_to_vmem [thread:$0]  %s594_s0, 128, %s21_s19, [#allocation4]  }
  0x13   :  { %s456_s9 = scalar_lea.hbm %s595_s1, 1024 }
  0x14   :  { %p457_p8 = scmp.ne.s32.totalorder %s595_s1, %s456_s9  ;;  %p460_p9 = scmp.lt.u32.totalorder %s456_s9, %s595_s1 }
  0x16   :  { %p462_p10 = pnand %p460_p9, %p457_p8 }
  0x18   :  { %465 = shalt.err (!%p462_p10)
}
  0x19   :  { %s466_s14 = scalar_lea.vmem %s542_s21, 1024  ;;  %p471_p12 = scmp.lt.s32.totalorder %s542_s21, %s542_s21 }
  0x1a   :  { %p467_p11 = scmp.ne.s32.totalorder %s542_s21, %s466_s14  ;;  %p472_p13 = scmp.lt.s32.totalorder %s466_s14, %s466_s14 }
  0x1c   :  { %p473_p0 = por %p472_p13, %p471_p12 }
  0x1e   :  { %p474_p1 = pnand %p473_p0, %p467_p11 }
  0x20   :  { %477 = shalt.err (!%p474_p1)
}
  0x21   :  { %s508_s0 = smov 256   ;;  %s509_s15 = smov 16  }
  0x22   :  { %35 = dma.hbm_to_vmem [thread:$0]  %s595_s1, 1024, %s542_s21, [#allocation7], %s508_s0, %s508_s0, %s509_s15  }
  0x23   :  { %500 = dma.done.wait [#allocation4], 128  }
  0x24   :  { %501 = vsyncadd [#allocation4], 4294967168 }
  0x25   :  { %502 = dma.done.wait [#allocation7], 1024  }
  0x26   :  { %503 = vsyncadd [#allocation7], 4294966272  ;;  %v510_v0 = vmov 0   ;;  %v418_v1 = vld [vmem:[#allocation6 + $0x4] ss:$16 sps:$4 sm:$0xff]   ;;  %v49_v9 = vld [vmem:[#allocation3] sm:$0xff]  ;;  %v61_v11 = vlaneseq  ;;  %v213_v43 = vstv %s598_s4 }
  0x27   :  { %157 = vmatprep.mubr.bf16.mxu0 %v510_v0  ;;  %198 = vmatprep.mubr.bf16.mxu1 %v510_v0  ;;  %v420_v2 = vld [vmem:[#allocation6 + $0xc] ss:$16 sps:$4 sm:$0xff]   ;;  %v422_v3 = vld [vmem:[#allocation6] ss:$16 sps:$4 sm:$0xff]   ;;  %v423_v4 = vld [vmem:[#allocation6 + $0x8] ss:$16 sps:$4 sm:$0xff]   ;;  %v50_v10 = vpack.c.bf16 %v49_v9, %v49_v9 }
  0x28   :  { %125 = vmatprep.subr.bf16.mxu0 %v418_v1  ;;  %166 = vmatprep.subr.bf16.mxu1 %v420_v2  ;;  %v424_v5 = vld [vmem:[#allocation6 + $0x24] ss:$16 sps:$4 sm:$0xff]   ;;  %v426_v6 = vld [vmem:[#allocation6 + $0x2c] ss:$16 sps:$4 sm:$0xff]   ;;  %v428_v7 = vld [vmem:[#allocation6 + $0x20] ss:$16 sps:$4 sm:$0xff]  }
  0x29   :  { %126 = vmatpush1.bf16.msra.mxu0 %v422_v3  ;;  %167 = vmatpush1.bf16.msra.mxu1 %v423_v4  ;;  %v429_v8 = vld [vmem:[#allocation6 + $0x28] ss:$16 sps:$4 sm:$0xff]   ;;  %vm121_vm0 = vcmask 261120   ;;  %v62_v12 = vshrl.u32 %v61_v11, 7  ;;  %s511_s21 = smov [#allocation8]   ;;  %vm381_vm1 = vcmask 57344  }
  0x2a   :  { %127 = vmatprep.subr.bf16.mxu0 %v424_v5  ;;  %168 = vmatprep.subr.bf16.mxu1 %v426_v6  ;;  %v211_v13 = vld [vmem:[%s597_s3] sm:$0xf]  ;;  %s389_s22 = sshll.u32 %s511_s21, 4  ;;  %s390_s22 = int_to_ptr.vmem [resolvable:$true] %s389_s22 }
  0x2b   :  { %v67_v14 = vsub.s32 1, %v62_v12  ;;  %v75_v15 = vsub.s32 3, %v62_v12  ;;  %v63_v18 = vsub.s32 0, %v62_v12  ;;  %v71_v19 = vsub.s32 2, %v62_v12  ;;  %v59_v20 = vld [vmem:[%s596_s2] sm:$0xf]  ;;  %p483_p3 = scmp.lt.s32.totalorder %s390_s22, %s390_s22 }
  0x2c   :  { %s478_s23 = scalar_lea.vmem %s390_s22, 16  ;;  %s482_s4 = scalar_lea.vmem %s390_s22, 32 }
  0x2d   :  { %128 = vmatpush1.bf16.msra.mxu0 %v428_v7  ;;  %169 = vmatpush1.bf16.msra.mxu1 %v429_v8  ;;  %v222_v16 = vrot.slane %v211_v13, %v67_v14  ;;  %v230_v17 = vrot.slane %v211_v13, %v75_v15  ;;  %v64_v21 = vrot.slane %v59_v20, %v63_v18  ;;  %p479_p2 = scmp.ne.s32.totalorder %s390_s22, %s478_s23  ;;  %p484_p4 = scmp.lt.s32.totalorder %s482_s4, %s478_s23 }
  0x2e   :  { %v72_v22 = vrot.slane %v59_v20, %v71_v19  ;;  %v68_v23 = vrot.slane %v59_v20, %v67_v14  ;;  %v76_v24 = vrot.slane %v59_v20, %v75_v15  ;;  %v218_v41 = vrot.slane %v211_v13, %v63_v18 }
  0x2f   :  { %v226_v42 = vrot.slane %v211_v13, %v71_v19  ;;  %p485_p5 = por %p484_p4, %p483_p3 }
  0x30   :  { %407 = vmatmul.mubr.msk.bf16.vlgmr.msra.gmra.mrb[0].mxu0 %vm121_vm0, %v50_v10  ;;  %408 = vmatmul.mubr.msk.bf16.vlgmr.msra.gmra.mrb[0].mxu1 %vm121_vm0, %v50_v10 }
  0x31   :  { %299 = vmatprep.mubr.f32.mxu1 %v222_v16  ;;  %369 = vmatprep.mubr.f32.mxu0 %v230_v17  ;;  %p486_p6 = pnand %p485_p5, %p479_p2 }
 0x103   :  { %v159_v25 = vpop.f32.mrb[0].mxu0  ;;  %v200_v26 = vpop.f32.mrb[0].mxu1 }
 0x104   :  { %v160_v27 = vadd.f32 %v159_v25, %v64_v21  ;;  %v201_v28 = vadd.f32 %v200_v26, %v72_v22  ;;  %v161_v29 = vpop.f32.mrb[1].mxu0  ;;  %v202_v30 = vpop.f32.mrb[1].mxu1 }
 0x105   :  { %v162_v31 = vadd.f32 %v161_v29, %v68_v23  ;;  %v203_v32 = vadd.f32 %v202_v30, %v76_v24  ;;  %v163_v33 = vpop.f32.mrb[2].mxu0  ;;  %v204_v34 = vpop.f32.mrb[2].mxu1 }
 0x106   :  { %v209_v35 = vmax.f32 %v201_v28, 0.0  ;;  %v164_v36 = vpop.f32.mrb[3].mxu0  ;;  %v205_v37 = vpop.f32.mrb[3].mxu1  ;;  %v207_v40 = vmax.f32 %v160_v27, 0.0 }
 0x107   :  { %v208_v38 = vmax.f32 %v162_v31, 0.0  ;;  %v210_v39 = vmax.f32 %v203_v32, 0.0 }
 0x109   :  { %235 = vmatprep.subr.mxu1 %v208_v38  ;;  %305 = vmatprep.subr.mxu0 %v210_v39 }
 0x10a   :  { %236 = vmatpush1.xpose.msra.mxu1 %v207_v40  ;;  %306 = vmatpush1.xpose.msra.mxu0 %v209_v35 }
 0x10d   :  { %300 = vmatmul.mubr.f32.vlgmr.msra.gmra.mrb[4].mxu1 %v218_v41  ;;  %370 = vmatmul.mubr.f32.vlgmr.msra.gmra.mrb[4].mxu0 %v226_v42 }
 0x1e0   :  { %v301_v44 = vpop.f32.mrb[4].mxu1  ;;  %v371_v45 = vpop.f32.mrb[4].mxu0 }
 0x1e1   :  { %v302_v46 = vadd.f32 %v301_v44, %v213_v43  ;;  %v303_v47 = vpop.f32.mrb[5].mxu1  ;;  %v373_v48 = vpop.f32.mrb[5].mxu0 }
 0x1e3   :  { %v372_v49 = vadd.f32 %v371_v45, %v302_v46 }
 0x1e5   :  { %v409_v50 = vmul.f32 -1.442695, %v372_v49 }
 0x1e7   :  { %430 = vpow2.f32 %v409_v50 }
 0x1f1   :  { %v431_v51 = vpop.eup %430 }
 0x1f2   :  { %v378_v52 = vadd.f32 1.0, %v431_v51 }
 0x1f4   :  { %432 = vrcp.f32 %v378_v52 }
 0x1fe   :  { %v433_v53 = vpop.eup %432 }
 0x1ff   :  { %382 = vst.msk [vmem:[#allocation8] sm:$0x1] %vm381_vm1, %v433_v53 }
 0x200   :  { %489 = shalt.err (!%p486_p6)
}
 0x201   :  { %s490_s26 = scalar_lea.hbm %s599_s5, 16 }
 0x202   :  { %p491_p7 = scmp.ne.s32.totalorder %s599_s5, %s490_s26  ;;  %p494_p8 = scmp.lt.u32.totalorder %s490_s26, %s599_s5 }
 0x204   :  { %p496_p9 = pnand %p494_p8, %p491_p7 }
 0x206   :  { %499 = shalt.err (!%p496_p9)
}
 0x207   :  { %392 = dma.vmem_to_hbm [thread:$0]  %s390_s22, 16, %s599_s5, [#allocation5]  }
 0x208   :  { %504 = dma.done.wait [#allocation5], 16  }
 0x209   :  { %505 = vsyncadd [#allocation5], 4294967280 }
 0x20a   :  { %396 = vsyncpa [#allocation4], 1 }
 0x20b   :  { %397 = vsyncpa [#allocation7], 1 }
 0x20c   :  { %398 = vsyncpa [#allocation5], 1 }

</bundles_post_ra>
